<compile_context>
chip_gen: v6e
topology: v6e:2x2x1
jax: 0.10.0
libtpu: 0.0.40
codegen_flags: <defaults>
</compile_context>

<pallas_src>
import functools

import jax
import jax.numpy as jnp
from jax.experimental import pallas as pl
from jax.experimental.pallas import tpu as pltpu


def pfn_kernel(x_ref, w_ref, shift_ref, out_ref, *, last_vfe, units):
    # x_ref:     (TN, M, C)  bf16 tile of voxels
    # w_ref:     (C, U)      bf16 linear weight with BN scale pre-folded
    # shift_ref: (1, U)      f32 folded BN shift = beta - mean * scale
    tn, m, c = x_ref.shape
    u = units

    w = w_ref[...]
    shift = shift_ref[...]

    if m % 16 == 0:
        # One tall MXU matmul: (TN*M, C) @ (C, U).  Collapsing the leading dims
        # is a pure sublane-tile reindex when M is a multiple of the tile.
        x2 = x_ref[...].reshape(tn * m, c)
        y = jnp.dot(x2, w, preferred_element_type=jnp.float32)      # (TN*M, U) f32
        y = jnp.maximum(y + shift, 0.0)
        y = y.reshape(tn, m, u)
    else:
        # Fallback for point counts that don't tile cleanly on sublanes.
        y = jnp.einsum('nmc,cu->nmu', x_ref[...], w,
                       preferred_element_type=jnp.float32)
        y = jnp.maximum(y + shift, 0.0)

    if last_vfe:
        out_ref[...] = jnp.max(y, axis=1)                            # (TN, U)
    else:
        y_max = jnp.max(y, axis=1, keepdims=True)                    # (TN, 1, U)
        out_ref[:, :, :u] = y
        out_ref[:, :, u:] = jnp.broadcast_to(y_max, y.shape)


def pfn_layer(inputs, weight, gamma, beta, running_mean, running_var,
              *, eps=1e-3, last_layer=False, tile_n=512):
    """Pallas PFNLayer forward (eval-mode BN, mode='max', aligned_distance=None).

    inputs: (N, M, C); weight: (U, C) from nn.Linear(C, U, bias=False);
    gamma/beta/running_mean/running_var: (U,).
    Returns float32 (N, 1, U) if last_layer else (N, M, 2U).
    """
    # TODO(synk): training-mode BN batch statistics, mode='avg' (num_voxels) and
    # the aligned_distance re-weighting path are not wired into this kernel.
    N, M, C = inputs.shape
    U = weight.shape[0]

    inv_std = 1.0 / jnp.sqrt(running_var.astype(jnp.float32) + eps)
    scale = gamma.astype(jnp.float32) * inv_std                           # (U,)
    shift = (beta.astype(jnp.float32)
             - running_mean.astype(jnp.float32) * scale).reshape(1, U)
    # Fold the BN scale into the linear weight; keep matmul operands in bf16.
    w_scaled = (weight.T.astype(jnp.float32) * scale).astype(jnp.bfloat16)  # (C, U)
    x = inputs.astype(jnp.bfloat16)

    tile_n = max(1, min(int(tile_n), N))
    if tile_n != N and tile_n % 8:
        tile_n = max(8, (tile_n // 8) * 8)   # keep 2-D last-layer block sublane-aligned

    if last_layer:
        out_shape = jax.ShapeDtypeStruct((N, U), jnp.float32)
        out_spec = pl.BlockSpec((tile_n, U), lambda i: (i, 0))
        out_row_elems = U
        out_elems = N * U
    else:
        out_shape = jax.ShapeDtypeStruct((N, M, 2 * U), jnp.float32)
        out_spec = pl.BlockSpec((tile_n, M, 2 * U), lambda i: (i, 0, 0))
        out_row_elems = M * 2 * U
        out_elems = N * M * 2 * U

    # Scoped-VMEM budget: double-buffered input + output blocks plus weights.
    block_bytes = 2 * (tile_n * M * C * 2 + tile_n * out_row_elems * 4) \
        + C * U * 2 + U * 4
    vmem_limit = int(min(max(block_bytes + (4 << 20), 32 << 20), 64 << 20))

    cost = pl.CostEstimate(
        flops=2 * N * M * C * U,
        transcendentals=0,
        bytes_accessed=N * M * C * 2 + C * U * 2 + U * 4 + out_elems * 4)

    kernel = functools.partial(pfn_kernel, last_vfe=last_layer, units=U)
    out = pl.pallas_call(
        kernel,
        out_shape=out_shape,
        grid_spec=pltpu.PrefetchScalarGridSpec(
            num_scalar_prefetch=0,
            grid=(pl.cdiv(N, tile_n),),
            in_specs=[
                pl.BlockSpec((tile_n, M, C), lambda i: (i, 0, 0)),
                pl.BlockSpec((C, U), lambda i: (0, 0)),
                pl.BlockSpec((1, U), lambda i: (0, 0)),
            ],
            out_specs=out_spec,
        ),
        compiler_params=pltpu.CompilerParams(
            dimension_semantics=("parallel",),
            vmem_limit_bytes=vmem_limit),
        cost_estimate=cost,
    )(x, w_scaled, shift)

    if last_layer:
        out = out.reshape(N, 1, U)
    return out


def pfn_reference(inputs, weight, gamma, beta, running_mean, running_var,
                  *, eps=1e-3, last_layer=False):
    """Pure-JAX reference matching the PyTorch forward (eval BN, mode='max')."""
    x = jnp.einsum('nmc,uc->nmu', inputs, weight)
    x = (x - running_mean) / jnp.sqrt(running_var + eps) * gamma + beta
    x = jax.nn.relu(x)
    x_max = jnp.max(x, axis=1, keepdims=True)
    if last_layer:
        return x_max
    return jnp.concatenate([x, jnp.broadcast_to(x_max, x.shape)], axis=-1)


if __name__ == "__main__":
    # Small deterministic shapes: in_channels=16, out_channels=64,
    # last_layer=False -> units = 32, output channels = 64.
    N, M, C, OUT = 16, 32, 16, 64
    U = OUT // 2

    key = jax.random.PRNGKey(0)
    k1, k2, k3, k4, k5, k6 = jax.random.split(key, 6)
    inputs = jax.random.normal(k1, (N, M, C), jnp.float32)
    weight = jax.random.normal(k2, (U, C), jnp.float32) * 0.1   # nn.Linear(C, U, bias=False)
    gamma = jax.random.uniform(k3, (U,), jnp.float32, minval=0.5, maxval=1.5)
    beta = jax.random.normal(k4, (U,), jnp.float32) * 0.1
    running_mean = jax.random.normal(k5, (U,), jnp.float32) * 0.1
    running_var = jax.random.uniform(k6, (U,), jnp.float32, minval=0.5, maxval=1.5)

    # Non-last layer: concat([x, x_max]) -> (N, M, 2U).
    out = pfn_layer(inputs, weight, gamma, beta, running_mean, running_var,
                    eps=1e-3, last_layer=False)
    jax.block_until_ready(out)
    ref = pfn_reference(inputs, weight, gamma, beta, running_mean, running_var,
                        eps=1e-3, last_layer=False)
    assert out.shape == (N, M, 2 * U), out.shape
    # bf16 matmul operands vs f32 reference -> relaxed tolerance.
    assert jnp.allclose(out, ref, atol=5e-2, rtol=5e-2), \
        float(jnp.max(jnp.abs(out - ref)))

    # Last layer: pooled features only -> (N, 1, U).
    out_last = pfn_layer(inputs, weight, gamma, beta, running_mean, running_var,
                         eps=1e-3, last_layer=True)
    jax.block_until_ready(out_last)
    ref_last = pfn_reference(inputs, weight, gamma, beta, running_mean,
                             running_var, eps=1e-3, last_layer=True)
    assert out_last.shape == (N, 1, U), out_last.shape
    assert jnp.allclose(out_last, ref_last, atol=5e-2, rtol=5e-2), \
        float(jnp.max(jnp.abs(out_last - ref_last)))

    print("KERNEL_OK")
</pallas_src>

<mosaic_0001>
module attributes {stable_mosaic.version = 11 : i64} {
  func.func @pfn_kernel(%arg0: i32, %arg1: memref<16x32x16xbf16, #tpu.memory_space<vmem>>, %arg2: memref<16x32xbf16, #tpu.memory_space<vmem>>, %arg3: memref<1x32xf32, #tpu.memory_space<vmem>>, %arg4: memref<16x32x64xf32, #tpu.memory_space<vmem>>) attributes {dimension_semantics = [#tpu.dimension_semantics<parallel>], iteration_bounds = array<i64: 1>, scalar_prefetch = 0 : i64, scratch_operands = 0 : i64, tpu.core_type = #tpu.core_type<tc>, window_params = [{transform_indices = @transform_0, window_bounds = array<i64: 16, 32, 16>}, {pipeline_mode = #tpu.pipeline_mode<synchronous>, transform_indices = @transform_1, window_bounds = array<i64: 16, 32>}, {pipeline_mode = #tpu.pipeline_mode<synchronous>, transform_indices = @transform_2, window_bounds = array<i64: 1, 32>}, {transform_indices = @transform_3, window_bounds = array<i64: 16, 32, 64>}]} {
    %c0 = arith.constant 0 : index
    %c0_0 = arith.constant 0 : index
    %0 = vector.load %arg2[%c0, %c0_0] : memref<16x32xbf16, #tpu.memory_space<vmem>>, vector<16x32xbf16>
    %c0_1 = arith.constant 0 : index
    %c0_2 = arith.constant 0 : index
    %1 = vector.load %arg3[%c0_1, %c0_2] : memref<1x32xf32, #tpu.memory_space<vmem>>, vector<1x32xf32>
    %c0_3 = arith.constant 0 : index
    %c0_4 = arith.constant 0 : index
    %c0_5 = arith.constant 0 : index
    %2 = vector.load %arg1[%c0_3, %c0_4, %c0_5] : memref<16x32x16xbf16, #tpu.memory_space<vmem>>, vector<16x32x16xbf16>
    %3 = vector.shape_cast %2 : vector<16x32x16xbf16> to vector<512x16xbf16>
    %cst = arith.constant dense<0.000000e+00> : vector<512x32xf32>
    %4 = tpu.matmul %3, %0, %cst {dimension_numbers = #tpu.dot_dimension_numbers<[1], [0], [0], [1], [0, 0, 1, 1], [], []>} : vector<512x16xbf16>, vector<16x32xbf16>, vector<512x32xf32> -> vector<512x32xf32>
    %5 = vector.broadcast %1 : vector<1x32xf32> to vector<512x32xf32>
    %6 = arith.addf %4, %5 : vector<512x32xf32>
    %cst_6 = arith.constant 0.000000e+00 : f32
    %7 = vector.broadcast %cst_6 : f32 to vector<512x32xf32>
    %8 = arith.maximumf %6, %7 : vector<512x32xf32>
    %9 = vector.shape_cast %8 : vector<512x32xf32> to vector<16x32x32xf32>
    %cst_7 = arith.constant dense<0xFF800000> : vector<16x32xf32>
    %10 = vector.multi_reduction <maximumf>, %9, %cst_7 [1] : vector<16x32x32xf32> to vector<16x32xf32>
    %11 = vector.shape_cast %10 : vector<16x32xf32> to vector<16x1x32xf32>
    %c0_8 = arith.constant 0 : index
    %c0_9 = arith.constant 0 : index
    %c0_10 = arith.constant 0 : index
    %12 = vector.load %arg4[%c0_8, %c0_9, %c0_10] : memref<16x32x64xf32, #tpu.memory_space<vmem>>, vector<16x32x32xf32>
    tpu.vector_store %arg4[%c0_8, %c0_9, %c0_10], %9 {strides = array<i32>} : memref<16x32x64xf32, #tpu.memory_space<vmem>>, vector<16x32x32xf32>,
    %13 = vector.shape_cast %11 : vector<16x1x32xf32> to vector<16x1x32xf32>
    %14 = vector.broadcast %13 : vector<16x1x32xf32> to vector<16x32x32xf32>
    %c0_11 = arith.constant 0 : index
    %c0_12 = arith.constant 0 : index
    %c32 = arith.constant 32 : index
    %15 = vector.load %arg4[%c0_11, %c0_12, %c32] : memref<16x32x64xf32, #tpu.memory_space<vmem>>, vector<16x32x32xf32>
    tpu.vector_store %arg4[%c0_11, %c0_12, %c32], %14 {strides = array<i32>} : memref<16x32x64xf32, #tpu.memory_space<vmem>>, vector<16x32x32xf32>,
    return
  }
  func.func @transform_0(%arg0: i32) -> (i32, i32, i32) {
    %c0_i32 = arith.constant 0 : i32
    %c0_i32_0 = arith.constant 0 : i32
    %c0_i32_1 = arith.constant 0 : i32
    return %arg0, %c0_i32, %c0_i32_0 : i32, i32, i32
  }
  func.func @transform_1(%arg0: i32) -> (i32, i32) {
    %c0_i32 = arith.constant 0 : i32
    %c0_i32_0 = arith.constant 0 : i32
    %c0_i32_1 = arith.constant 0 : i32
    return %c0_i32, %c0_i32_0 : i32, i32
  }
  func.func @transform_2(%arg0: i32) -> (i32, i32) {
    %c0_i32 = arith.constant 0 : i32
    %c0_i32_0 = arith.constant 0 : i32
    %c0_i32_1 = arith.constant 0 : i32
    return %c0_i32, %c0_i32_0 : i32, i32
  }
  func.func @transform_3(%arg0: i32) -> (i32, i32, i32) {
    %c0_i32 = arith.constant 0 : i32
    %c0_i32_0 = arith.constant 0 : i32
    %c0_i32_1 = arith.constant 0 : i32
    return %arg0, %c0_i32, %c0_i32_0 : i32, i32, i32
  }
}

</mosaic_0001>

<bundles_post_ra>
// kernel: tpu_custom_call.1
= control target key start
LH: loop header
LB: loop body
LE: loop exit
PB: predicated region body
PF: predicated region fallthrough
CT: control target
= control target key end

     0   :  { %vm255_vm0 = vcmask 130048   ;;  %s1840_s0 = inlined_call_operand.vmem [shape: bf16[16,32,16], index: 0, kind: input, shape index: {}]   ;;  %s1841_s1 = inlined_call_operand.vmem [shape: bf16[16,32], index: 1, kind: input, shape index: {}]   ;;  %s1842_s2 = inlined_call_operand.vmem [shape: f32[1,32], index: 2, kind: input, shape index: {}]   ;;  %s1843_s3 = inlined_call_operand.hbm [shape: f32[16,32,64], index: 3, kind: output, shape index: {}]  }
   0x1   :  { %v1294_v0 = vld [vmem:[%s1841_s1] sm:$0xff]   ;;  %v1297_v3 = vld [vmem:[%s1840_s0 + $0x8] sm:$0xff]   ;;  %v1299_v5 = vld [vmem:[%s1840_s0 + $0x10] sm:$0xff]  }
   0x2   :  { %v1295_v1 = vld [vmem:[%s1840_s0] sm:$0xff]   ;;  %1222 = vmatprep.subr.bf16.mxu0 %v1294_v0  ;;  %1288 = vmatprep.subr.bf16.mxu1 %v1294_v0  ;;  %v1298_v4 = vld [vmem:[%s1840_s0 + $0x88] sm:$0xff]   ;;  %v1300_v6 = vld [vmem:[%s1840_s0 + $0x90] sm:$0xff]  }
   0x3   :  { %v1296_v2 = vld [vmem:[%s1840_s0 + $0x80] sm:$0xff]   ;;  %1223 = vmatpush3.bf16.msra.mxu0 %v1294_v0  ;;  %1289 = vmatpush3.bf16.msra.mxu1 %v1294_v0  ;;  %v1301_v7 = vld [vmem:[%s1840_s0 + $0x18] sm:$0xff]   ;;  %v1305_v11 = vld [vmem:[%s1840_s0 + $0x28] sm:$0xff]  }
   0x4   :  { %1224 = vmatprep.mubr.msk.bf16.mxu0 %vm255_vm0, %v1295_v1  ;;  %1256 = vmatprep.mubr.msk.bf16.mxu1 %vm255_vm0, %v1296_v2  ;;  %v1302_v8 = vld [vmem:[%s1840_s0 + $0x98] sm:$0xff]   ;;  %v1303_v9 = vld [vmem:[%s1840_s0 + $0x20] sm:$0xff]   ;;  %v1306_v12 = vld [vmem:[%s1840_s0 + $0xa8] sm:$0xff]  }
   0x5   :  { %v1304_v10 = vld [vmem:[%s1840_s0 + $0xa0] sm:$0xff]   ;;  %v1307_v13 = vld [vmem:[%s1840_s0 + $0x30] sm:$0xff]   ;;  %v1309_v15 = vld [vmem:[%s1840_s0 + $0x38] sm:$0xff]  }
   0x6   :  { %1225 = vmatmul.mubr.msk.bf16.vlgmr.msra.gmra.mxu0 %vm255_vm0, %v1297_v3  ;;  %1257 = vmatmul.mubr.msk.bf16.vlgmr.msra.gmra.mxu1 %vm255_vm0, %v1298_v4  ;;  %v1308_v14 = vld [vmem:[%s1840_s0 + $0xb0] sm:$0xff]   ;;  %v1310_v16 = vld [vmem:[%s1840_s0 + $0xb8] sm:$0xff]   ;;  %v1311_v17 = vld [vmem:[%s1840_s0 + $0x40] sm:$0xff]  }
   0x7   :  { %1228 = vmatprep.mubr.msk.bf16.mxu0 %vm255_vm0, %v1299_v5  ;;  %1260 = vmatprep.mubr.msk.bf16.mxu1 %vm255_vm0, %v1300_v6  ;;  %v1312_v18 = vld [vmem:[%s1840_s0 + $0xc0] sm:$0xff]  }
   0xe   :  { %1229 = vmatmul.mubr.msk.bf16.gmra.mxu0 %vm255_vm0, %v1301_v7  ;;  %1261 = vmatmul.mubr.msk.bf16.gmra.mxu1 %vm255_vm0, %v1302_v8 }
   0xf   :  { %1232 = vmatprep.mubr.msk.bf16.mxu0 %vm255_vm0, %v1303_v9  ;;  %1264 = vmatprep.mubr.msk.bf16.mxu1 %vm255_vm0, %v1304_v10 }
  0x16   :  { %1233 = vmatmul.mubr.msk.bf16.gmra.mxu0 %vm255_vm0, %v1305_v11  ;;  %1265 = vmatmul.mubr.msk.bf16.gmra.mxu1 %vm255_vm0, %v1306_v12 }
  0x17   :  { %1236 = vmatprep.mubr.msk.bf16.mxu0 %vm255_vm0, %v1307_v13  ;;  %1268 = vmatprep.mubr.msk.bf16.mxu1 %vm255_vm0, %v1308_v14 }
  0x1e   :  { %1237 = vmatmul.mubr.msk.bf16.gmra.mxu0 %vm255_vm0, %v1309_v15  ;;  %1269 = vmatmul.mubr.msk.bf16.gmra.mxu1 %vm255_vm0, %v1310_v16 }
  0x1f   :  { %1240 = vmatprep.mubr.msk.bf16.mxu0 %vm255_vm0, %v1311_v17  ;;  %1272 = vmatprep.mubr.msk.bf16.mxu1 %vm255_vm0, %v1312_v18 }
  0x20   :  { %8 = vsyncpa [#allocation3], 0  ;;  %v1313_v19 = vld [vmem:[%s1840_s0 + $0x48] sm:$0xff]   ;;  %v1315_v21 = vld [vmem:[%s1840_s0 + $0x50] sm:$0xff]   ;;  %vm705_vm1 = vcmask 261120   ;;  %vm1042_vm2 = vcmask 523520  }
  0x21   :  { %v1314_v20 = vld [vmem:[%s1840_s0 + $0xc8] sm:$0xff]   ;;  %v1316_v22 = vld [vmem:[%s1840_s0 + $0xd0] sm:$0xff]   ;;  %v1317_v23 = vld [vmem:[%s1840_s0 + $0x58] sm:$0xff]  }
  0x22   :  { %v1318_v24 = vld [vmem:[%s1840_s0 + $0xd8] sm:$0xff]   ;;  %v1319_v25 = vld [vmem:[%s1840_s0 + $0x60] sm:$0xff]   ;;  %v1321_v27 = vld [vmem:[%s1840_s0 + $0x68] sm:$0xff]  }
  0x23   :  { %v1320_v26 = vld [vmem:[%s1840_s0 + $0xe0] sm:$0xff]   ;;  %v1322_v28 = vld [vmem:[%s1840_s0 + $0xe8] sm:$0xff]   ;;  %v1323_v29 = vld [vmem:[%s1840_s0 + $0x70] sm:$0xff]  }
  0x24   :  { %v1324_v30 = vld [vmem:[%s1840_s0 + $0xf0] sm:$0xff]   ;;  %v1325_v31 = vld [vmem:[%s1840_s0 + $0x78] sm:$0xff]   ;;  %v1507_v33 = vld [vmem:[%s1842_s2] ss:$0 sm:$0xff]  ;;  %s1350_s2 = smov [#allocation2]  }
  0x25   :  { %v1326_v32 = vld [vmem:[%s1840_s0 + $0xf8] sm:$0xff]   ;;  %s1349_s0 = smov 32   ;;  %s1112_s23 = sshll.u32 %s1350_s2, 4  ;;  %s1113_s23 = int_to_ptr.vmem [resolvable:$true] %s1112_s23 }
  0x26   :  { %1241 = vmatmul.mubr.msk.bf16.gmra.mxu0 %vm255_vm0, %v1313_v19  ;;  %1273 = vmatmul.mubr.msk.bf16.gmra.mxu1 %vm255_vm0, %v1314_v20  ;;  %s1327_s24 = scalar_lea.vmem %s1113_s23, 8192  ;;  %p1332_p1 = scmp.lt.s32.totalorder %s1113_s23, %s1113_s23 }
  0x27   :  { %1244 = vmatprep.mubr.msk.bf16.mxu0 %vm255_vm0, %v1315_v21  ;;  %1276 = vmatprep.mubr.msk.bf16.mxu1 %vm255_vm0, %v1316_v22  ;;  %p1328_p0 = scmp.ne.s32.totalorder %s1113_s23, %s1327_s24  ;;  %p1333_p2 = scmp.lt.s32.totalorder %s1327_s24, %s1327_s24 }
  0x29   :  { %p1334_p3 = por %p1333_p2, %p1332_p1 }
  0x2b   :  { %p1335_p4 = pnand %p1334_p3, %p1328_p0 }
  0x2e   :  { %1245 = vmatmul.mubr.msk.bf16.gmra.mxu0 %vm255_vm0, %v1317_v23  ;;  %1277 = vmatmul.mubr.msk.bf16.gmra.mxu1 %vm255_vm0, %v1318_v24 }
  0x2f   :  { %1248 = vmatprep.mubr.msk.bf16.mxu0 %vm255_vm0, %v1319_v25  ;;  %1280 = vmatprep.mubr.msk.bf16.mxu1 %vm255_vm0, %v1320_v26 }
  0x36   :  { %1249 = vmatmul.mubr.msk.bf16.gmra.mxu0 %vm255_vm0, %v1321_v27  ;;  %1281 = vmatmul.mubr.msk.bf16.gmra.mxu1 %vm255_vm0, %v1322_v28 }
  0x37   :  { %1252 = vmatprep.mubr.msk.bf16.mxu0 %vm255_vm0, %v1323_v29  ;;  %1284 = vmatprep.mubr.msk.bf16.mxu1 %vm255_vm0, %v1324_v30 }
  0x3e   :  { %1253 = vmatmul.mubr.msk.bf16.gmra.mxu0 %vm255_vm0, %v1325_v31  ;;  %1285 = vmatmul.mubr.msk.bf16.gmra.mxu1 %vm255_vm0, %v1326_v32 }
  0xc6   :  { %v1226_v34 = vpop.f32.mrf.mxu0  ;;  %v1258_v35 = vpop.f32.mrf.mxu1 }
  0xc7   :  { %v395_v36 = vadd.f32 %v1226_v34, %v1507_v33  ;;  %v523_v37 = vadd.f32 %v1258_v35, %v1507_v33 }
  0xc8   :  { %v386_v38 = vpop.f32.mrf.mxu0  ;;  %v514_v39 = vpop.f32.mrf.mxu1 }
  0xc9   :  { %v643_v40 = vmax.f32 %v395_v36, 0.0  ;;  %v675_v41 = vmax.f32 %v523_v37, 0.0  ;;  %v387_v42 = vadd.f32 %v1507_v33, %v386_v38  ;;  %v515_v43 = vadd.f32 %v1507_v33, %v514_v39 }
  0xca   :  { %v1227_v44 = vpop.f32.mrf.mxu0  ;;  %v1259_v45 = vpop.f32.mrf.mxu1 }
  0xcb   :  { %916 = vst.msk [vmem:[#allocation2 + $0x10] sm:$0xff] %vm705_vm1, %v643_v40  ;;  %948 = vst.msk [vmem:[#allocation2 + $0x110] sm:$0xff] %vm705_vm1, %v675_v41  ;;  %v641_v46 = vmax.f32 %v387_v42, 0.0  ;;  %v673_v47 = vmax.f32 %v515_v43, 0.0  ;;  %v398_v48 = vadd.f32 %v1227_v44, %v1507_v33  ;;  %v526_v49 = vadd.f32 %v1259_v45, %v1507_v33 }
  0xcc   :  { %v389_v50 = vpop.f32.mrf.mxu0  ;;  %v517_v51 = vpop.f32.mrf.mxu1  ;;  %v709_v54 = vsel %vm705_vm1, %v643_v40, -inf  ;;  %v813_v55 = vsel %vm705_vm1, %v675_v41, -inf }
  0xcd   :  { %914 = vst.msk [vmem:[#allocation2] sm:$0xff] %vm705_vm1, %v641_v46  ;;  %946 = vst.msk [vmem:[#allocation2 + $0x100] sm:$0xff] %vm705_vm1, %v673_v47  ;;  %v390_v52 = vadd.f32 %v1507_v33, %v389_v50  ;;  %v518_v53 = vadd.f32 %v1507_v33, %v517_v51  ;;  %v644_v56 = vmax.f32 %v398_v48, 0.0  ;;  %v676_v57 = vmax.f32 %v526_v49, 0.0 }
  0xce   :  { %v1230_v58 = vpop.f32.mrf.mxu0  ;;  %v1262_v59 = vpop.f32.mrf.mxu1  ;;  %v706_v0 = vsel %vm705_vm1, %v641_v46, -inf  ;;  %v810_v1 = vsel %vm705_vm1, %v673_v47, -inf }
  0xcf   :  { %v642_v60 = vmax.f32 %v390_v52, 0.0  ;;  %v674_v61 = vmax.f32 %v518_v53, 0.0  ;;  %v411_v62 = vadd.f32 %v1230_v58, %v1507_v33  ;;  %v539_v63 = vadd.f32 %v1262_v59, %v1507_v33  ;;  %917 = vst.msk [vmem:[#allocation2 + $0x18] sm:$0xff] %vm705_vm1, %v644_v56  ;;  %949 = vst.msk [vmem:[#allocation2 + $0x118] sm:$0xff] %vm705_vm1, %v676_v57 }
  0xd0   :  { %v711_v2 = vsel %vm705_vm1, %v644_v56, -inf  ;;  %v815_v3 = vsel %vm705_vm1, %v676_v57, -inf  ;;  %v402_v4 = vpop.f32.mrf.mxu0  ;;  %v530_v5 = vpop.f32.mrf.mxu1 }
  0xd1   :  { %v707_v6 = vsel %vm705_vm1, %v642_v60, -inf  ;;  %915 = vst.msk [vmem:[#allocation2 + $0x8] sm:$0xff] %vm705_vm1, %v642_v60  ;;  %v811_v7 = vsel %vm705_vm1, %v674_v61, -inf  ;;  %947 = vst.msk [vmem:[#allocation2 + $0x108] sm:$0xff] %vm705_vm1, %v674_v61  ;;  %v647_v8 = vmax.f32 %v411_v62, 0.0  ;;  %v679_v9 = vmax.f32 %v539_v63, 0.0 }
  0xd2   :  { %v708_v10 = vmax.f32 %v706_v0, %v707_v6  ;;  %v812_v11 = vmax.f32 %v810_v1, %v811_v7  ;;  %v403_v12 = vadd.f32 %v1507_v33, %v402_v4  ;;  %v531_v13 = vadd.f32 %v1507_v33, %v530_v5  ;;  %v1231_v14 = vpop.f32.mrf.mxu0  ;;  %v1263_v15 = vpop.f32.mrf.mxu1 }
  0xd3   :  { %v722_v16 = vsel %vm705_vm1, %v647_v8, -inf  ;;  %920 = vst.msk [vmem:[#allocation2 + $0x30] sm:$0xff] %vm705_vm1, %v647_v8  ;;  %v826_v17 = vsel %vm705_vm1, %v679_v9, -inf  ;;  %952 = vst.msk [vmem:[#allocation2 + $0x130] sm:$0xff] %vm705_vm1, %v679_v9  ;;  %v414_v18 = vadd.f32 %v1231_v14, %v1507_v33  ;;  %v542_v19 = vadd.f32 %v1263_v15, %v1507_v33 }
  0xd4   :  { %v710_v20 = vmax.f32 %v708_v10, %v709_v54  ;;  %v814_v21 = vmax.f32 %v812_v11, %v813_v55  ;;  %v645_v22 = vmax.f32 %v403_v12, 0.0  ;;  %v677_v23 = vmax.f32 %v531_v13, 0.0  ;;  %v405_v24 = vpop.f32.mrf.mxu0  ;;  %v533_v25 = vpop.f32.mrf.mxu1 }
  0xd5   :  { %v648_v26 = vmax.f32 %v414_v18, 0.0  ;;  %v680_v27 = vmax.f32 %v542_v19, 0.0  ;;  %v406_v28 = vadd.f32 %v1507_v33, %v405_v24  ;;  %v534_v29 = vadd.f32 %v1507_v33, %v533_v25 }
  0xd6   :  { %v1545_v30 = vmax.f32 %v814_v21, %v815_v3  ;;  %v719_v31 = vsel %vm705_vm1, %v645_v22, -inf  ;;  %918 = vst.msk [vmem:[#allocation2 + $0x20] sm:$0xff] %vm705_vm1, %v645_v22  ;;  %v823_v32 = vsel %vm705_vm1, %v677_v23, -inf  ;;  %950 = vst.msk [vmem:[#allocation2 + $0x120] sm:$0xff] %vm705_vm1, %v677_v23  ;;  %v1234_v34 = vpop.f32.mrf.mxu0  ;;  %v1266_v35 = vpop.f32.mrf.mxu1  ;;  %v712_v36 = vmax.f32 %v710_v20, %v711_v2 }
  0xd7   :  { %v724_v37 = vsel %vm705_vm1, %v648_v26, -inf  ;;  %921 = vst.msk [vmem:[#allocation2 + $0x38] sm:$0xff] %vm705_vm1, %v648_v26  ;;  %v1554_v38 = vsel %vm705_vm1, %v680_v27, -inf  ;;  %953 = vst.msk [vmem:[#allocation2 + $0x138] sm:$0xff] %vm705_vm1, %v680_v27  ;;  %v646_v39 = vmax.f32 %v406_v28, 0.0  ;;  %v678_v40 = vmax.f32 %v534_v29, 0.0 }
  0xd8   :  { %v427_v41 = vadd.f32 %v1234_v34, %v1507_v33  ;;  %v555_v42 = vadd.f32 %v1266_v35, %v1507_v33  ;;  %v418_v43 = vpop.f32.mrf.mxu0  ;;  %v546_v44 = vpop.f32.mrf.mxu1  ;;  %v713_v45 = vrot.slane %v712_v36, 4  ;;  %v817_v46 = vrot.slane %v1545_v30, 4 }
  0xd9   :  { %v720_v47 = vsel %vm705_vm1, %v646_v39, -inf  ;;  %919 = vst.msk [vmem:[#allocation2 + $0x28] sm:$0xff] %vm705_vm1, %v646_v39  ;;  %v824_v48 = vsel %vm705_vm1, %v678_v40, -inf  ;;  %951 = vst.msk [vmem:[#allocation2 + $0x128] sm:$0xff] %vm705_vm1, %v678_v40  ;;  %v419_v49 = vadd.f32 %v1507_v33, %v418_v43  ;;  %v547_v50 = vadd.f32 %v1507_v33, %v546_v44 }
  0xda   :  { %v721_v51 = vmax.f32 %v719_v31, %v720_v47  ;;  %v825_v52 = vmax.f32 %v823_v32, %v824_v48  ;;  %v651_v53 = vmax.f32 %v427_v41, 0.0  ;;  %v683_v54 = vmax.f32 %v555_v42, 0.0  ;;  %v1235_v55 = vpop.f32.mrf.mxu0  ;;  %v1267_v56 = vpop.f32.mrf.mxu1 }
  0xdb   :  { %v649_v57 = vmax.f32 %v419_v49, 0.0  ;;  %v681_v58 = vmax.f32 %v547_v50, 0.0  ;;  %v430_v59 = vadd.f32 %v1235_v55, %v1507_v33  ;;  %v558_v60 = vadd.f32 %v1267_v56, %v1507_v33 }
  0xdc   :  { %v723_v61 = vmax.f32 %v721_v51, %v722_v16  ;;  %v1568_v62 = vmax.f32 %v825_v52, %v826_v17  ;;  %v735_v63 = vsel %vm705_vm1, %v651_v53, -inf  ;;  %924 = vst.msk [vmem:[#allocation2 + $0x50] sm:$0xff] %vm705_vm1, %v651_v53  ;;  %v839_v0 = vsel %vm705_vm1, %v683_v54, -inf  ;;  %956 = vst.msk [vmem:[#allocation2 + $0x150] sm:$0xff] %vm705_vm1, %v683_v54  ;;  %v421_v1 = vpop.f32.mrf.mxu0  ;;  %v549_v2 = vpop.f32.mrf.mxu1 }
  0xdd   :  { %v732_v3 = vsel %vm705_vm1, %v649_v57, -inf  ;;  %922 = vst.msk [vmem:[#allocation2 + $0x40] sm:$0xff] %vm705_vm1, %v649_v57  ;;  %v836_v4 = vsel %vm705_vm1, %v681_v58, -inf  ;;  %954 = vst.msk [vmem:[#allocation2 + $0x140] sm:$0xff] %vm705_vm1, %v681_v58  ;;  %v652_v5 = vmax.f32 %v430_v59, 0.0  ;;  %v684_v6 = vmax.f32 %v558_v60, 0.0 }
  0xde   :  { %v1578_v7 = vmax.f32 %v723_v61, %v724_v37  ;;  %v422_v8 = vadd.f32 %v1507_v33, %v421_v1  ;;  %v550_v9 = vadd.f32 %v1507_v33, %v549_v2  ;;  %v1238_v10 = vpop.f32.mrf.mxu0  ;;  %v1270_v11 = vpop.f32.mrf.mxu1  ;;  %v714_v12 = vmax.f32 %v712_v36, %v713_v45 }
  0xdf   :  { %v737_v13 = vsel %vm705_vm1, %v652_v5, -inf  ;;  %925 = vst.msk [vmem:[#allocation2 + $0x58] sm:$0xff] %vm705_vm1, %v652_v5  ;;  %v841_v14 = vsel %vm705_vm1, %v684_v6, -inf  ;;  %957 = vst.msk [vmem:[#allocation2 + $0x158] sm:$0xff] %vm705_vm1, %v684_v6  ;;  %v443_v15 = vadd.f32 %v1238_v10, %v1507_v33  ;;  %v571_v16 = vadd.f32 %v1270_v11, %v1507_v33 }
  0xe0   :  { %v650_v17 = vmax.f32 %v422_v8, 0.0  ;;  %v682_v18 = vmax.f32 %v550_v9, 0.0  ;;  %v434_v19 = vpop.f32.mrf.mxu0  ;;  %v562_v20 = vpop.f32.mrf.mxu1  ;;  %v715_v21 = vrot.slane %v714_v12, 2  ;;  %v1589_v22 = vmax.f32 %v1545_v30, %v817_v46 }
  0xe1   :  { %v655_v23 = vmax.f32 %v443_v15, 0.0  ;;  %v687_v24 = vmax.f32 %v571_v16, 0.0  ;;  %v435_v25 = vadd.f32 %v1507_v33, %v434_v19  ;;  %v563_v26 = vadd.f32 %v1507_v33, %v562_v20 }
  0xe2   :  { %v733_v27 = vsel %vm705_vm1, %v650_v17, -inf  ;;  %923 = vst.msk [vmem:[#allocation2 + $0x48] sm:$0xff] %vm705_vm1, %v650_v17  ;;  %v837_v28 = vsel %vm705_vm1, %v682_v18, -inf  ;;  %955 = vst.msk [vmem:[#allocation2 + $0x148] sm:$0xff] %vm705_vm1, %v682_v18  ;;  %v1239_v29 = vpop.f32.mrf.mxu0  ;;  %v1271_v31 = vpop.f32.mrf.mxu1  ;;  %v716_v32 = vmax.f32 %v714_v12, %v715_v21  ;;  %v819_v30 = vrot.slane %v1589_v22, 2 }
  0xe3   :  { %v734_v34 = vmax.f32 %v732_v3, %v733_v27  ;;  %v838_v35 = vmax.f32 %v836_v4, %v837_v28  ;;  %v748_v36 = vsel %vm705_vm1, %v655_v23, -inf  ;;  %928 = vst.msk [vmem:[#allocation2 + $0x70] sm:$0xff] %vm705_vm1, %v655_v23  ;;  %v852_v37 = vsel %vm705_vm1, %v687_v24, -inf  ;;  %960 = vst.msk [vmem:[#allocation2 + $0x170] sm:$0xff] %vm705_vm1, %v687_v24 }
  0xe4   :  { %v653_v39 = vmax.f32 %v435_v25, 0.0  ;;  %v685_v40 = vmax.f32 %v563_v26, 0.0  ;;  %v446_v41 = vadd.f32 %v1239_v29, %v1507_v33  ;;  %v574_v42 = vadd.f32 %v1271_v31, %v1507_v33  ;;  %v437_v43 = vpop.f32.mrf.mxu0  ;;  %v565_v44 = vpop.f32.mrf.mxu1 }
  0xe5   :  { %v736_v45 = vmax.f32 %v734_v34, %v735_v63  ;;  %v840_v46 = vmax.f32 %v838_v35, %v839_v0  ;;  %v438_v47 = vadd.f32 %v1507_v33, %v437_v43  ;;  %v566_v48 = vadd.f32 %v1507_v33, %v565_v44 }
  0xe6   :  { %v745_v49 = vsel %vm705_vm1, %v653_v39, -inf  ;;  %926 = vst.msk [vmem:[#allocation2 + $0x60] sm:$0xff] %vm705_vm1, %v653_v39  ;;  %v849_v50 = vsel %vm705_vm1, %v685_v40, -inf  ;;  %958 = vst.msk [vmem:[#allocation2 + $0x160] sm:$0xff] %vm705_vm1, %v685_v40  ;;  %v656_v51 = vmax.f32 %v446_v41, 0.0  ;;  %v688_v52 = vmax.f32 %v574_v42, 0.0  ;;  %v1242_v53 = vpop.f32.mrf.mxu0  ;;  %v1274_v54 = vpop.f32.mrf.mxu1 }
  0xe7   :  { %v1610_v55 = vmax.f32 %v736_v45, %v737_v13  ;;  %v1612_v56 = vmax.f32 %v840_v46, %v841_v14  ;;  %v654_v57 = vmax.f32 %v438_v47, 0.0  ;;  %v686_v58 = vmax.f32 %v566_v48, 0.0 }
  0xe8   :  { %v750_v59 = vsel %vm705_vm1, %v656_v51, -inf  ;;  %929 = vst.msk [vmem:[#allocation2 + $0x78] sm:$0xff] %vm705_vm1, %v656_v51  ;;  %v854_v60 = vsel %vm705_vm1, %v688_v52, -inf  ;;  %961 = vst.msk [vmem:[#allocation2 + $0x178] sm:$0xff] %vm705_vm1, %v688_v52  ;;  %v717_v61 = vrot.slane %v716_v32, 1  ;;  %v459_v63 = vadd.f32 %v1242_v53, %v1507_v33  ;;  %v450_v0 = vpop.f32.mrf.mxu0  ;;  %v578_v1 = vpop.f32.mrf.mxu1 }
  0xe9   :  { %v746_v2 = vsel %vm705_vm1, %v654_v57, -inf  ;;  %927 = vst.msk [vmem:[#allocation2 + $0x68] sm:$0xff] %vm705_vm1, %v654_v57  ;;  %v850_v3 = vsel %vm705_vm1, %v686_v58, -inf  ;;  %959 = vst.msk [vmem:[#allocation2 + $0x168] sm:$0xff] %vm705_vm1, %v686_v58  ;;  %v587_v4 = vadd.f32 %v1274_v54, %v1507_v33  ;;  %v451_v5 = vadd.f32 %v1507_v33, %v450_v0 }
  0xea   :  { %v747_v6 = vmax.f32 %v745_v49, %v746_v2  ;;  %v851_v8 = vmax.f32 %v849_v50, %v850_v3  ;;  %v718_v9 = vmax.f32 %v716_v32, %v717_v61  ;;  %v659_v10 = vmax.f32 %v459_v63, 0.0  ;;  %v1243_v11 = vpop.f32.mrf.mxu0  ;;  %v1275_v12 = vpop.f32.mrf.mxu1 }
  0xeb   :  { %v691_v13 = vmax.f32 %v587_v4, 0.0  ;;  %v657_v14 = vmax.f32 %v451_v5, 0.0  ;;  %v579_v15 = vadd.f32 %v1507_v33, %v578_v1  ;;  %v820_v16 = vmax.f32 %v1589_v22, %v819_v30 }
  0xec   :  { %v749_v17 = vmax.f32 %v747_v6, %v748_v36  ;;  %v853_v18 = vmax.f32 %v851_v8, %v852_v37  ;;  %994 = vrot.lane.b32.xlu0 %v718_v9, %s1349_s0  ;;  %v1629_v19 = vsel %vm705_vm1, %v659_v10, -inf  ;;  %932 = vst.msk [vmem:[#allocation2 + $0x90] sm:$0xff] %vm705_vm1, %v659_v10  ;;  %v462_v20 = vadd.f32 %v1243_v11, %v1507_v33  ;;  %v581_v21 = vpop.f32.mrf.mxu1  ;;  %v453_v23 = vpop.f32.mrf.mxu0 }
  0xed   :  { %v865_v24 = vsel %vm705_vm1, %v691_v13, -inf  ;;  %964 = vst.msk [vmem:[#allocation2 + $0x190] sm:$0xff] %vm705_vm1, %v691_v13  ;;  %v758_v22 = vsel %vm705_vm1, %v657_v14, -inf  ;;  %930 = vst.msk [vmem:[#allocation2 + $0x80] sm:$0xff] %vm705_vm1, %v657_v14  ;;  %v689_v25 = vmax.f32 %v579_v15, 0.0  ;;  %v821_v26 = vrot.slane %v820_v16, 1 }
  0xee   :  { %v1637_v27 = vmax.f32 %v749_v17, %v750_v59  ;;  %v1639_v28 = vmax.f32 %v853_v18, %v854_v60  ;;  %v660_v29 = vmax.f32 %v462_v20, 0.0  ;;  %v590_v31 = vadd.f32 %v1275_v12, %v1507_v33  ;;  %v1246_v32 = vpop.f32.mrf.mxu0  ;;  %v1278_v30 = vpop.f32.mrf.mxu1 }
  0xef   :  { %v862_v34 = vsel %vm705_vm1, %v689_v25, -inf  ;;  %962 = vst.msk [vmem:[#allocation2 + $0x180] sm:$0xff] %vm705_vm1, %v689_v25  ;;  %v822_v35 = vmax.f32 %v820_v16, %v821_v26  ;;  %v582_v36 = vadd.f32 %v1507_v33, %v581_v21  ;;  %v829_v37 = vmax.f32 %v1568_v62, %v1554_v38 }
  0xf0   :  { %v763_v39 = vsel %vm705_vm1, %v660_v29, -inf  ;;  %933 = vst.msk [vmem:[#allocation2 + $0x98] sm:$0xff] %vm705_vm1, %v660_v29  ;;  %v692_v40 = vmax.f32 %v590_v31, 0.0  ;;  %v454_v41 = vadd.f32 %v1507_v33, %v453_v23  ;;  %v726_v42 = vrot.slane %v1578_v7, 4  ;;  %v466_v43 = vpop.f32.mrf.mxu0  ;;  %v594_v44 = vpop.f32.mrf.mxu1 }
  0xf1   :  { %1010 = vrot.lane.b32.xlu0 %v822_v35, %s1349_s0  ;;  %v690_v45 = vmax.f32 %v582_v36, 0.0  ;;  %v830_v46 = vrot.slane %v829_v37, 4  ;;  %v475_v47 = vadd.f32 %v1246_v32, %v1507_v33  ;;  %v603_v48 = vadd.f32 %v1278_v30, %v1507_v33 }
  0xf2   :  { %v867_v38 = vsel %vm705_vm1, %v692_v40, -inf  ;;  %965 = vst.msk [vmem:[#allocation2 + $0x198] sm:$0xff] %vm705_vm1, %v692_v40  ;;  %v658_v62 = vmax.f32 %v454_v41, 0.0  ;;  %v727_v49 = vmax.f32 %v1578_v7, %v726_v42  ;;  %v467_v50 = vadd.f32 %v1507_v33, %v466_v43  ;;  %v1247_v51 = vpop.f32.mrf.mxu0  ;;  %v1279_v52 = vpop.f32.mrf.mxu1 }
  0xf3   :  { %v863_v53 = vsel %vm705_vm1, %v690_v45, -inf  ;;  %963 = vst.msk [vmem:[#allocation2 + $0x188] sm:$0xff] %vm705_vm1, %v690_v45  ;;  %v831_v54 = vmax.f32 %v829_v37, %v830_v46  ;;  %v663_v57 = vmax.f32 %v475_v47, 0.0  ;;  %v695_v58 = vmax.f32 %v603_v48, 0.0 }
  0xf4   :  { %v864_v59 = vmax.f32 %v862_v34, %v863_v53  ;;  %v759_v60 = vsel %vm705_vm1, %v658_v62, -inf  ;;  %931 = vst.msk [vmem:[#allocation2 + $0x88] sm:$0xff] %vm705_vm1, %v658_v62  ;;  %v728_v61 = vrot.slane %v727_v49, 2  ;;  %v661_v63 = vmax.f32 %v467_v50, 0.0  ;;  %v469_v0 = vpop.f32.mrf.mxu0  ;;  %v597_v7 = vpop.f32.mrf.mxu1 }
  0xf5   :  { %v832_v1 = vrot.slane %v831_v54, 2  ;;  %v760_v2 = vmax.f32 %v758_v22, %v759_v60  ;;  %v774_v3 = vsel %vm705_vm1, %v663_v57, -inf  ;;  %936 = vst.msk [vmem:[#allocation2 + $0xb0] sm:$0xff] %vm705_vm1, %v663_v57  ;;  %v1665_v4 = vsel %vm705_vm1, %v695_v58, -inf  ;;  %968 = vst.msk [vmem:[#allocation2 + $0x1b0] sm:$0xff] %vm705_vm1, %v695_v58 }
  0xf6   :  { %v866_v5 = vmax.f32 %v864_v59, %v865_v24  ;;  %v729_v6 = vmax.f32 %v727_v49, %v728_v61  ;;  %v771_v8 = vsel %vm705_vm1, %v661_v63, -inf  ;;  %934 = vst.msk [vmem:[#allocation2 + $0xa0] sm:$0xff] %vm705_vm1, %v661_v63  ;;  %v595_v9 = vadd.f32 %v1507_v33, %v594_v44  ;;  %v1250_v10 = vpop.f32.mrf.mxu0  ;;  %v1282_v11 = vpop.f32.mrf.mxu1 }
  0xf7   :  { %v833_v12 = vmax.f32 %v831_v54, %v832_v1  ;;  %v762_v13 = vmax.f32 %v760_v2, %v1629_v19  ;;  %v478_v14 = vadd.f32 %v1247_v51, %v1507_v33  ;;  %v606_v15 = vadd.f32 %v1279_v52, %v1507_v33 }
  0xf8   :  { %v1674_v16 = vmax.f32 %v866_v5, %v867_v38  ;;  %v730_v17 = vrot.slane %v729_v6, 1  ;;  %v693_v18 = vmax.f32 %v595_v9, 0.0  ;;  %v470_v20 = vadd.f32 %v1507_v33, %v469_v0  ;;  %v482_v21 = vpop.f32.mrf.mxu0  ;;  %v610_v23 = vpop.f32.mrf.mxu1 }
  0xf9   :  { %v834_v24 = vrot.slane %v833_v12, 1  ;;  %v1677_v22 = vmax.f32 %v762_v13, %v763_v39  ;;  %v664_v25 = vmax.f32 %v478_v14, 0.0  ;;  %v696_v26 = vmax.f32 %v606_v15, 0.0 }
  0xfa   :  { %v731_v29 = vmax.f32 %v729_v6, %v730_v17  ;;  %v875_v19 = vsel %vm705_vm1, %v693_v18, -inf  ;;  %966 = vst.msk [vmem:[#allocation2 + $0x1a0] sm:$0xff] %vm705_vm1, %v693_v18  ;;  %v662_v31 = vmax.f32 %v470_v20, 0.0  ;;  %v598_v32 = vadd.f32 %v1507_v33, %v597_v7  ;;  %v1251_v30 = vpop.f32.mrf.mxu0  ;;  %v1283_v34 = vpop.f32.mrf.mxu1 }
  0xfb   :  { %v835_v35 = vmax.f32 %v833_v12, %v834_v24  ;;  %v776_v36 = vsel %vm705_vm1, %v664_v25, -inf  ;;  %937 = vst.msk [vmem:[#allocation2 + $0xb8] sm:$0xff] %vm705_vm1, %v664_v25  ;;  %v880_v37 = vsel %vm705_vm1, %v696_v26, -inf  ;;  %969 = vst.msk [vmem:[#allocation2 + $0x1b8] sm:$0xff] %vm705_vm1, %v696_v26  ;;  %v739_v39 = vrot.slane %v1610_v55, 4 }
  0xfc   :  { %996 = vrot.lane.b32.xlu0 %v731_v29, %s1349_s0  ;;  %v772_v40 = vsel %vm705_vm1, %v662_v31, -inf  ;;  %935 = vst.msk [vmem:[#allocation2 + $0xa8] sm:$0xff] %vm705_vm1, %v662_v31  ;;  %v694_v41 = vmax.f32 %v598_v32, 0.0  ;;  %v843_v42 = vrot.slane %v1612_v56, 4  ;;  %v491_v43 = vadd.f32 %v1250_v10, %v1507_v33  ;;  %v485_v44 = vpop.f32.mrf.mxu0  ;;  %v613_v45 = vpop.f32.mrf.mxu1 }
  0xfd   :  { %1012 = vrot.lane.b32.xlu1 %v835_v35, %s1349_s0  ;;  %v773_v46 = vmax.f32 %v771_v8, %v772_v40  ;;  %v740_v47 = vmax.f32 %v1610_v55, %v739_v39  ;;  %v619_v48 = vadd.f32 %v1282_v11, %v1507_v33  ;;  %v483_v38 = vadd.f32 %v1507_v33, %v482_v21 }
  0xfe   :  { %v876_v62 = vsel %vm705_vm1, %v694_v41, -inf  ;;  %967 = vst.msk [vmem:[#allocation2 + $0x1a8] sm:$0xff] %vm705_vm1, %v694_v41  ;;  %v844_v49 = vmax.f32 %v1612_v56, %v843_v42  ;;  %v667_v50 = vmax.f32 %v491_v43, 0.0  ;;  %v611_v51 = vadd.f32 %v1507_v33, %v610_v23  ;;  %v1254_v58 = vpop.f32.mrf.mxu0  ;;  %v1286_v59 = vpop.f32.mrf.mxu1 }
  0xff   :  { %v775_v52 = vmax.f32 %v773_v46, %v774_v3  ;;  %v877_v53 = vmax.f32 %v875_v19, %v876_v62  ;;  %v741_v54 = vrot.slane %v740_v47, 2  ;;  %v699_v57 = vmax.f32 %v619_v48, 0.0 }
 0x100   :  { %v845_v55 = vrot.slane %v844_v49, 2  ;;  %v787_v60 = vsel %vm705_vm1, %v667_v50, -inf  ;;  %940 = vst.msk [vmem:[#allocation2 + $0xd0] sm:$0xff] %vm705_vm1, %v667_v50  ;;  %v665_v61 = vmax.f32 %v483_v38, 0.0  ;;  %v697_v63 = vmax.f32 %v611_v51, 0.0  ;;  %v498_v11 = vpop.f32.mrf.mxu0  ;;  %v626_v12 = vpop.f32.mrf.mxu1 }
 0x101   :  { %v1702_v0 = vmax.f32 %v775_v52, %v776_v36  ;;  %v879_v56 = vmax.f32 %v877_v53, %v1665_v4  ;;  %v742_v7 = vmax.f32 %v740_v47, %v741_v54  ;;  %v891_v1 = vsel %vm705_vm1, %v699_v57, -inf  ;;  %972 = vst.msk [vmem:[#allocation2 + $0x1d0] sm:$0xff] %vm705_vm1, %v699_v57 }
 0x102   :  { %v846_v2 = vmax.f32 %v844_v49, %v845_v55  ;;  %v784_v3 = vsel %vm705_vm1, %v665_v61, -inf  ;;  %938 = vst.msk [vmem:[#allocation2 + $0xc0] sm:$0xff] %vm705_vm1, %v665_v61  ;;  %v888_v5 = vsel %vm705_vm1, %v697_v63, -inf  ;;  %970 = vst.msk [vmem:[#allocation2 + $0x1c0] sm:$0xff] %vm705_vm1, %v697_v63  ;;  %v494_v6 = vadd.f32 %v1251_v30, %v1507_v33  ;;  %v1287_v35 = vpop.f32.mrf.mxu1 }
 0x103   :  { %v1712_v8 = vmax.f32 %v879_v56, %v880_v37  ;;  %v743_v9 = vrot.slane %v742_v7, 1  ;;  %v622_v4 = vadd.f32 %v1283_v34, %v1507_v33  ;;  %v486_v10 = vadd.f32 %v1507_v33, %v485_v44  ;;  %v1255_v34 = vpop.f32.mrf.mxu0 }
 0x104   :  { %v847_v13 = vrot.slane %v846_v2, 1  ;;  %v668_v14 = vmax.f32 %v494_v6, 0.0  ;;  %v614_v15 = vadd.f32 %v1507_v33, %v613_v45  ;;  %v752_v17 = vrot.slane %v1637_v27, 4  ;;  %v629_v51 = vpop.f32.mrf.mxu1 }
 0x105   :  { %v744_v18 = vmax.f32 %v742_v7, %v743_v9  ;;  %v700_v20 = vmax.f32 %v622_v4, 0.0  ;;  %v666_v21 = vmax.f32 %v486_v10, 0.0  ;;  %v507_v23 = vadd.f32 %v1254_v58, %v1507_v33  ;;  %v501_v50 = vpop.f32.mrf.mxu0 }
 0x106   :  { %v848_v24 = vmax.f32 %v846_v2, %v847_v13  ;;  %v789_v25 = vsel %vm705_vm1, %v668_v14, -inf  ;;  %941 = vst.msk [vmem:[#allocation2 + $0xd8] sm:$0xff] %vm705_vm1, %v668_v14  ;;  %v698_v26 = vmax.f32 %v614_v15, 0.0  ;;  %v753_v29 = vmax.f32 %v1637_v27, %v752_v17 }
 0x107   :  { %998 = vrot.lane.b32.xlu1 %v744_v18, %s1349_s0  ;;  %v893_v19 = vsel %vm705_vm1, %v700_v20, -inf  ;;  %973 = vst.msk [vmem:[#allocation2 + $0x1d8] sm:$0xff] %vm705_vm1, %v700_v20  ;;  %v785_v31 = vsel %vm705_vm1, %v666_v21, -inf  ;;  %939 = vst.msk [vmem:[#allocation2 + $0xc8] sm:$0xff] %vm705_vm1, %v666_v21  ;;  %v671_v32 = vmax.f32 %v507_v23, 0.0  ;;  %v635_v30 = vadd.f32 %v1286_v59, %v1507_v33 }
 0x108   :  { %1014 = vrot.lane.b32.xlu0 %v848_v24, %s1349_s0  ;;  %v786_v36 = vmax.f32 %v784_v3, %v785_v31  ;;  %v889_v27 = vsel %vm705_vm1, %v698_v26, -inf  ;;  %971 = vst.msk [vmem:[#allocation2 + $0x1c8] sm:$0xff] %vm705_vm1, %v698_v26  ;;  %v754_v37 = vrot.slane %v753_v29, 2  ;;  %v499_v39 = vadd.f32 %v1507_v33, %v498_v11 }
 0x109   :  { %v890_v40 = vmax.f32 %v888_v5, %v889_v27  ;;  %v800_v41 = vsel %vm705_vm1, %v671_v32, -inf  ;;  %944 = vst.msk [vmem:[#allocation2 + $0xf0] sm:$0xff] %vm705_vm1, %v671_v32  ;;  %v703_v42 = vmax.f32 %v635_v30, 0.0  ;;  %v627_v43 = vadd.f32 %v1507_v33, %v626_v12 }
 0x10a   :  { %v788_v44 = vmax.f32 %v786_v36, %v787_v60  ;;  %v755_v45 = vmax.f32 %v753_v29, %v754_v37  ;;  %v669_v46 = vmax.f32 %v499_v39, 0.0  ;;  %v856_v47 = vrot.slane %v1639_v28, 4 }
 0x10b   :  { %v892_v48 = vmax.f32 %v890_v40, %v891_v1  ;;  %v904_v38 = vsel %vm705_vm1, %v703_v42, -inf  ;;  %976 = vst.msk [vmem:[#allocation2 + $0x1f0] sm:$0xff] %vm705_vm1, %v703_v42  ;;  %v701_v62 = vmax.f32 %v627_v43, 0.0  ;;  %v510_v49 = vadd.f32 %v1255_v34, %v1507_v33 }
 0x10c   :  { %v790_v52 = vmax.f32 %v788_v44, %v789_v25  ;;  %v756_v53 = vrot.slane %v755_v45, 1  ;;  %v797_v54 = vsel %vm705_vm1, %v669_v46, -inf  ;;  %942 = vst.msk [vmem:[#allocation2 + $0xe0] sm:$0xff] %vm705_vm1, %v669_v46  ;;  %v857_v57 = vmax.f32 %v1639_v28, %v856_v47 }
 0x10d   :  { %v894_v58 = vmax.f32 %v892_v48, %v893_v19  ;;  %v901_v59 = vsel %vm705_vm1, %v701_v62, -inf  ;;  %974 = vst.msk [vmem:[#allocation2 + $0x1e0] sm:$0xff] %vm705_vm1, %v701_v62  ;;  %v672_v55 = vmax.f32 %v510_v49, 0.0  ;;  %v638_v60 = vadd.f32 %v1287_v35, %v1507_v33 }
 0x10e   :  { %v757_v61 = vmax.f32 %v755_v45, %v756_v53  ;;  %v858_v63 = vrot.slane %v857_v57, 2  ;;  %v502_v56 = vadd.f32 %v1507_v33, %v501_v50  ;;  %v630_v7 = vadd.f32 %v1507_v33, %v629_v51 }
 0x10f   :  { %v802_v1 = vsel %vm705_vm1, %v672_v55, -inf  ;;  %945 = vst.msk [vmem:[#allocation2 + $0xf8] sm:$0xff] %vm705_vm1, %v672_v55  ;;  %v704_v2 = vmax.f32 %v638_v60, 0.0  ;;  %v765_v28 = vrot.slane %v1677_v22, 4  ;;  %v869_v3 = vrot.slane %v1674_v16, 4 }
 0x110   :  { %1000 = vrot.lane.b32.xlu1 %v757_v61, %s1349_s0  ;;  %v859_v5 = vmax.f32 %v857_v57, %v858_v63  ;;  %v670_v6 = vmax.f32 %v502_v56, 0.0  ;;  %v702_v9 = vmax.f32 %v630_v7, 0.0  ;;  %v778_v4 = vrot.slane %v1702_v0, 4 }
 0x111   :  { %v906_v10 = vsel %vm705_vm1, %v704_v2, -inf  ;;  %977 = vst.msk [vmem:[#allocation2 + $0x1f8] sm:$0xff] %vm705_vm1, %v704_v2  ;;  %v766_v33 = vmax.f32 %v1677_v22, %v765_v28  ;;  %v870_v11 = vmax.f32 %v1674_v16, %v869_v3  ;;  %v882_v12 = vrot.slane %v1712_v8, 4 }
 0x112   :  { %v860_v13 = vrot.slane %v859_v5, 1  ;;  %v798_v14 = vsel %vm705_vm1, %v670_v6, -inf  ;;  %943 = vst.msk [vmem:[#allocation2 + $0xe8] sm:$0xff] %vm705_vm1, %v670_v6  ;;  %v902_v15 = vsel %vm705_vm1, %v702_v9, -inf  ;;  %975 = vst.msk [vmem:[#allocation2 + $0x1e8] sm:$0xff] %vm705_vm1, %v702_v9  ;;  %v779_v17 = vmax.f32 %v1702_v0, %v778_v4 }
 0x113   :  { %v799_v18 = vmax.f32 %v797_v54, %v798_v14  ;;  %v903_v20 = vmax.f32 %v901_v59, %v902_v15  ;;  %v767_v21 = vrot.slane %v766_v33, 2  ;;  %v871_v23 = vrot.slane %v870_v11, 2 }
 0x114   :  { %v861_v22 = vmax.f32 %v859_v5, %v860_v13  ;;  %v780_v24 = vrot.slane %v779_v17, 2  ;;  %v883_v16 = vmax.f32 %v1712_v8, %v882_v12  ;;  %v791_v25 = vrot.slane %v790_v52, 4 }
 0x115   :  { %v801_v26 = vmax.f32 %v799_v18, %v800_v41  ;;  %v905_v29 = vmax.f32 %v903_v20, %v904_v38  ;;  %v768_v19 = vmax.f32 %v766_v33, %v767_v21  ;;  %v872_v31 = vmax.f32 %v870_v11, %v871_v23 }
 0x116   :  { %1016 = vrot.lane.b32.xlu1 %v861_v22, %s1349_s0  ;;  %v781_v32 = vmax.f32 %v779_v17, %v780_v24  ;;  %v884_v30 = vrot.slane %v883_v16, 2  ;;  %v792_v34 = vmax.f32 %v790_v52, %v791_v25  ;;  %v895_v35 = vrot.slane %v894_v58, 4 }
 0x117   :  { %v803_v0 = vmax.f32 %v801_v26, %v802_v1  ;;  %v907_v36 = vmax.f32 %v905_v29, %v906_v10  ;;  %v769_v27 = vrot.slane %v768_v19, 1  ;;  %v873_v8 = vrot.slane %v872_v31, 1 }
 0x118   :  { %v782_v37 = vrot.slane %v781_v32, 1  ;;  %v885_v39 = vmax.f32 %v883_v16, %v884_v30  ;;  %v793_v40 = vrot.slane %v792_v34, 2  ;;  %v896_v42 = vmax.f32 %v894_v58, %v895_v35 }
 0x119   :  { %v770_v43 = vmax.f32 %v768_v19, %v769_v27  ;;  %v804_v44 = vrot.slane %v803_v0, 4  ;;  %v908_v41 = vrot.slane %v907_v36, 4  ;;  %v874_v50 = vmax.f32 %v872_v31, %v873_v8 }
 0x11a   :  { %v783_v45 = vmax.f32 %v781_v32, %v782_v37  ;;  %v886_v46 = vrot.slane %v885_v39, 1  ;;  %v794_v47 = vmax.f32 %v792_v34, %v793_v40  ;;  %v897_v48 = vrot.slane %v896_v42, 2 }
 0x11b   :  { %1002 = vrot.lane.b32.xlu0 %v770_v43, %s1349_s0  ;;  %v805_v38 = vmax.f32 %v803_v0, %v804_v44  ;;  %v909_v62 = vmax.f32 %v907_v36, %v908_v41 }
 0x11c   :  { %1004 = vrot.lane.b32.xlu1 %v783_v45, %s1349_s0  ;;  %v795_v49 = vrot.slane %v794_v47, 1  ;;  %v898_v51 = vmax.f32 %v896_v42, %v897_v48  ;;  %v887_v54 = vmax.f32 %v885_v39, %v886_v46 }
 0x11d   :  { %v806_v52 = vrot.slane %v805_v38, 2  ;;  %v910_v53 = vrot.slane %v909_v62, 2 }
 0x11e   :  { %v796_v57 = vmax.f32 %v794_v47, %v795_v49  ;;  %v899_v55 = vrot.slane %v898_v51, 1 }
 0x11f   :  { %1018 = vrot.lane.b32.xlu0 %v874_v50, %s1349_s0  ;;  %v807_v58 = vmax.f32 %v805_v38, %v806_v52  ;;  %v911_v59 = vmax.f32 %v909_v62, %v910_v53 }
 0x120   :  { %1020 = vrot.lane.b32.xlu1 %v887_v54, %s1349_s0  ;;  %v900_v56 = vmax.f32 %v898_v51, %v899_v55 }
 0x121   :  { %v808_v60 = vrot.slane %v807_v58, 1  ;;  %v912_v63 = vrot.slane %v911_v59, 1 }
 0x123   :  { %1006 = vrot.lane.b32.xlu0 %v796_v57, %s1349_s0  ;;  %v809_v61 = vmax.f32 %v807_v58, %v808_v60  ;;  %v913_v7 = vmax.f32 %v911_v59, %v912_v63 }
 0x125   :  { %1008 = vrot.lane.b32.xlu1 %v809_v61, %s1349_s0 }
 0x127   :  { %1022 = vrot.lane.b32.xlu0 %v900_v56, %s1349_s0 }
 0x129   :  { %1024 = vrot.lane.b32.xlu1 %v913_v7, %s1349_s0 }
 0x15e   :  { %v995_v1 = vpop.permute.xlu0 %994 }
 0x15f   :  { %1043 = vst.msk [vmem:[#allocation2] sm:$0xff] %vm1042_vm2, %v995_v1  ;;  %1044 = vst.msk [vmem:[#allocation2 + $0x8] sm:$0xff] %vm1042_vm2, %v995_v1 }
 0x160   :  { %1045 = vst.msk [vmem:[#allocation2 + $0x10] sm:$0xff] %vm1042_vm2, %v995_v1  ;;  %1046 = vst.msk [vmem:[#allocation2 + $0x18] sm:$0xff] %vm1042_vm2, %v995_v1 }
 0x163   :  { %v1011_v2 = vpop.permute.xlu0 %1010 }
 0x164   :  { %1075 = vst.msk [vmem:[#allocation2 + $0x100] sm:$0xff] %vm1042_vm2, %v1011_v2  ;;  %1076 = vst.msk [vmem:[#allocation2 + $0x108] sm:$0xff] %vm1042_vm2, %v1011_v2 }
 0x165   :  { %1077 = vst.msk [vmem:[#allocation2 + $0x110] sm:$0xff] %vm1042_vm2, %v1011_v2  ;;  %1078 = vst.msk [vmem:[#allocation2 + $0x118] sm:$0xff] %vm1042_vm2, %v1011_v2 }
 0x16e   :  { %v997_v28 = vpop.permute.xlu0 %996 }
 0x16f   :  { %v1013_v3 = vpop.permute.xlu1 %1012  ;;  %1047 = vst.msk [vmem:[#allocation2 + $0x20] sm:$0xff] %vm1042_vm2, %v997_v28  ;;  %1048 = vst.msk [vmem:[#allocation2 + $0x28] sm:$0xff] %vm1042_vm2, %v997_v28 }
 0x170   :  { %1049 = vst.msk [vmem:[#allocation2 + $0x30] sm:$0xff] %vm1042_vm2, %v997_v28  ;;  %1050 = vst.msk [vmem:[#allocation2 + $0x38] sm:$0xff] %vm1042_vm2, %v997_v28 }
 0x171   :  { %1079 = vst.msk [vmem:[#allocation2 + $0x120] sm:$0xff] %vm1042_vm2, %v1013_v3  ;;  %1080 = vst.msk [vmem:[#allocation2 + $0x128] sm:$0xff] %vm1042_vm2, %v1013_v3 }
 0x172   :  { %1081 = vst.msk [vmem:[#allocation2 + $0x130] sm:$0xff] %vm1042_vm2, %v1013_v3  ;;  %1082 = vst.msk [vmem:[#allocation2 + $0x138] sm:$0xff] %vm1042_vm2, %v1013_v3 }
 0x179   :  { %v999_v5 = vpop.permute.xlu1 %998 }
 0x17a   :  { %1051 = vst.msk [vmem:[#allocation2 + $0x40] sm:$0xff] %vm1042_vm2, %v999_v5  ;;  %1052 = vst.msk [vmem:[#allocation2 + $0x48] sm:$0xff] %vm1042_vm2, %v999_v5  ;;  %v1015_v6 = vpop.permute.xlu0 %1014 }
 0x17b   :  { %1053 = vst.msk [vmem:[#allocation2 + $0x50] sm:$0xff] %vm1042_vm2, %v999_v5  ;;  %1054 = vst.msk [vmem:[#allocation2 + $0x58] sm:$0xff] %vm1042_vm2, %v999_v5 }
 0x17c   :  { %1083 = vst.msk [vmem:[#allocation2 + $0x140] sm:$0xff] %vm1042_vm2, %v1015_v6  ;;  %1084 = vst.msk [vmem:[#allocation2 + $0x148] sm:$0xff] %vm1042_vm2, %v1015_v6 }
 0x17d   :  { %1085 = vst.msk [vmem:[#allocation2 + $0x150] sm:$0xff] %vm1042_vm2, %v1015_v6  ;;  %1086 = vst.msk [vmem:[#allocation2 + $0x158] sm:$0xff] %vm1042_vm2, %v1015_v6 }
 0x182   :  { %v1001_v9 = vpop.permute.xlu1 %1000 }
 0x183   :  { %1055 = vst.msk [vmem:[#allocation2 + $0x60] sm:$0xff] %vm1042_vm2, %v1001_v9  ;;  %1056 = vst.msk [vmem:[#allocation2 + $0x68] sm:$0xff] %vm1042_vm2, %v1001_v9 }
 0x184   :  { %1057 = vst.msk [vmem:[#allocation2 + $0x70] sm:$0xff] %vm1042_vm2, %v1001_v9  ;;  %1058 = vst.msk [vmem:[#allocation2 + $0x78] sm:$0xff] %vm1042_vm2, %v1001_v9 }
 0x188   :  { %v1017_v4 = vpop.permute.xlu1 %1016 }
 0x189   :  { %1087 = vst.msk [vmem:[#allocation2 + $0x160] sm:$0xff] %vm1042_vm2, %v1017_v4  ;;  %1088 = vst.msk [vmem:[#allocation2 + $0x168] sm:$0xff] %vm1042_vm2, %v1017_v4 }
 0x18a   :  { %1089 = vst.msk [vmem:[#allocation2 + $0x170] sm:$0xff] %vm1042_vm2, %v1017_v4  ;;  %1090 = vst.msk [vmem:[#allocation2 + $0x178] sm:$0xff] %vm1042_vm2, %v1017_v4 }
 0x18d   :  { %v1003_v10 = vpop.permute.xlu0 %1002 }
 0x18e   :  { %1059 = vst.msk [vmem:[#allocation2 + $0x80] sm:$0xff] %vm1042_vm2, %v1003_v10  ;;  %1060 = vst.msk [vmem:[#allocation2 + $0x88] sm:$0xff] %vm1042_vm2, %v1003_v10  ;;  %v1005_v33 = vpop.permute.xlu1 %1004 }
 0x18f   :  { %1061 = vst.msk [vmem:[#allocation2 + $0x90] sm:$0xff] %vm1042_vm2, %v1003_v10  ;;  %1062 = vst.msk [vmem:[#allocation2 + $0x98] sm:$0xff] %vm1042_vm2, %v1003_v10 }
 0x190   :  { %1063 = vst.msk [vmem:[#allocation2 + $0xa0] sm:$0xff] %vm1042_vm2, %v1005_v33  ;;  %1064 = vst.msk [vmem:[#allocation2 + $0xa8] sm:$0xff] %vm1042_vm2, %v1005_v33 }
 0x191   :  { %1065 = vst.msk [vmem:[#allocation2 + $0xb0] sm:$0xff] %vm1042_vm2, %v1005_v33  ;;  %1066 = vst.msk [vmem:[#allocation2 + $0xb8] sm:$0xff] %vm1042_vm2, %v1005_v33  ;;  %v1019_v11 = vpop.permute.xlu0 %1018 }
 0x192   :  { %1091 = vst.msk [vmem:[#allocation2 + $0x180] sm:$0xff] %vm1042_vm2, %v1019_v11  ;;  %1092 = vst.msk [vmem:[#allocation2 + $0x188] sm:$0xff] %vm1042_vm2, %v1019_v11  ;;  %v1021_v12 = vpop.permute.xlu1 %1020 }
 0x193   :  { %1093 = vst.msk [vmem:[#allocation2 + $0x190] sm:$0xff] %vm1042_vm2, %v1019_v11  ;;  %1094 = vst.msk [vmem:[#allocation2 + $0x198] sm:$0xff] %vm1042_vm2, %v1019_v11 }
 0x194   :  { %1095 = vst.msk [vmem:[#allocation2 + $0x1a0] sm:$0xff] %vm1042_vm2, %v1021_v12  ;;  %1096 = vst.msk [vmem:[#allocation2 + $0x1a8] sm:$0xff] %vm1042_vm2, %v1021_v12 }
 0x195   :  { %1097 = vst.msk [vmem:[#allocation2 + $0x1b0] sm:$0xff] %vm1042_vm2, %v1021_v12  ;;  %1098 = vst.msk [vmem:[#allocation2 + $0x1b8] sm:$0xff] %vm1042_vm2, %v1021_v12  ;;  %v1007_v13 = vpop.permute.xlu0 %1006 }
 0x196   :  { %1067 = vst.msk [vmem:[#allocation2 + $0xc0] sm:$0xff] %vm1042_vm2, %v1007_v13  ;;  %1068 = vst.msk [vmem:[#allocation2 + $0xc8] sm:$0xff] %vm1042_vm2, %v1007_v13 }
 0x197   :  { %1069 = vst.msk [vmem:[#allocation2 + $0xd0] sm:$0xff] %vm1042_vm2, %v1007_v13  ;;  %1070 = vst.msk [vmem:[#allocation2 + $0xd8] sm:$0xff] %vm1042_vm2, %v1007_v13  ;;  %v1009_v14 = vpop.permute.xlu1 %1008 }
 0x198   :  { %1071 = vst.msk [vmem:[#allocation2 + $0xe0] sm:$0xff] %vm1042_vm2, %v1009_v14  ;;  %1072 = vst.msk [vmem:[#allocation2 + $0xe8] sm:$0xff] %vm1042_vm2, %v1009_v14 }
 0x199   :  { %1073 = vst.msk [vmem:[#allocation2 + $0xf0] sm:$0xff] %vm1042_vm2, %v1009_v14  ;;  %1074 = vst.msk [vmem:[#allocation2 + $0xf8] sm:$0xff] %vm1042_vm2, %v1009_v14  ;;  %v1023_v15 = vpop.permute.xlu0 %1022 }
 0x19a   :  { %1099 = vst.msk [vmem:[#allocation2 + $0x1c0] sm:$0xff] %vm1042_vm2, %v1023_v15  ;;  %1100 = vst.msk [vmem:[#allocation2 + $0x1c8] sm:$0xff] %vm1042_vm2, %v1023_v15 }
 0x19b   :  { %1101 = vst.msk [vmem:[#allocation2 + $0x1d0] sm:$0xff] %vm1042_vm2, %v1023_v15  ;;  %1102 = vst.msk [vmem:[#allocation2 + $0x1d8] sm:$0xff] %vm1042_vm2, %v1023_v15  ;;  %v1025_v17 = vpop.permute.xlu1 %1024 }
 0x19c   :  { %1103 = vst.msk [vmem:[#allocation2 + $0x1e0] sm:$0xff] %vm1042_vm2, %v1025_v17  ;;  %1104 = vst.msk [vmem:[#allocation2 + $0x1e8] sm:$0xff] %vm1042_vm2, %v1025_v17 }
 0x19d   :  { %1105 = vst.msk [vmem:[#allocation2 + $0x1f0] sm:$0xff] %vm1042_vm2, %v1025_v17  ;;  %1106 = vst.msk [vmem:[#allocation2 + $0x1f8] sm:$0xff] %vm1042_vm2, %v1025_v17 }
 0x19e   :  { %1338 = shalt.err (!%p1335_p4)
}
 0x19f   :  { %s1351_s25 = smov 128   ;;  %s1352_s26 = smov 8  }
 0x1a0   :  { %1118 = dma.vmem_to_hbm [thread:$0]  %s1113_s23, 8192, %s1843_s3, [#allocation3], %s1351_s25, %s1351_s25, %s1352_s26  }
 0x1a1   :  { %1347 = dma.done.wait [#allocation3], 8192  }
 0x1a2   :  { %1348 = vsyncadd [#allocation3], 4294959104 }
 0x1a3   :  { %1122 = vsyncpa [#allocation3], 1 }

</bundles_post_ra>
